<compile_context>
chip_gen: v5e
topology: v5e:2x2
jax: 0.10.0
libtpu: 0.0.40
codegen_flags: <defaults>
</compile_context>

<pallas_src>
from functools import partial

import numpy as np
import jax
import jax.numpy as jnp
from jax import lax
from jax.experimental import pallas as pl
from jax.experimental.pallas import tpu as pltpu

_MAX_BLOCK_HW = 4096                 # lanes per HW tile (multiple of 128)
_X_TILE_BUDGET = 8 * 1024 * 1024     # bytes per X tile buffer (Pallas double-buffers)


def _cdiv(a, b):
    return -(-a // b)


def _gaussian_weights(xg_ref, yg_ref, wx_ref, wy_ref, isx_ref, isy_ref):
    dx = xg_ref[...] - wx_ref[...]          # (1, HWt) - (C, 1) -> (C, HWt)
    dy = yg_ref[...] - wy_ref[...]
    return jnp.exp(-(dx * dx) * isx_ref[...] - (dy * dy) * isy_ref[...])


def _gs_kernel_single(x_ref, xg_ref, yg_ref, wx_ref, wy_ref,
                      isx_ref, isy_ref, scale_ref, o_ref):
    """Whole HW extent in one tile: direct reduce, no accumulator / pl.when."""
    ws = _gaussian_weights(xg_ref, yg_ref, wx_ref, wy_ref, isx_ref, isy_ref)
    o_ref[...] = jnp.sum(x_ref[...] * ws, axis=-1) * scale_ref[...]


def _gs_kernel_tiled(x_ref, xg_ref, yg_ref, wx_ref, wy_ref,
                     isx_ref, isy_ref, scale_ref, o_ref, acc_ref,
                     *, hw_total, block_hw, needs_mask):
    """HW reduction tiled: accumulate into a 128-lane f32 scratch, reduce once."""
    k = pl.program_id(1)
    nk = pl.num_programs(1)

    @pl.when(k == 0)
    def _init():
        acc_ref[...] = jnp.zeros_like(acc_ref)

    # Gaussian spatial weights for this HW tile (recomputed per step: EUP work
    # hidden under the memory-bound X stream).
    ws = _gaussian_weights(xg_ref, yg_ref, wx_ref, wy_ref, isx_ref, isy_ref)

    if needs_mask:
        lane = lax.broadcasted_iota(jnp.int32, (1, 1, block_hw), 2)
        valid = (k * block_hw + lane) < hw_total        # (1, 1, block_hw)

    # Chunked MAC into a 128-lane accumulator; 2 interleaved partials keep
    # VALU add latency off the critical path at large block_hw.
    n_chunks = block_hw // 128
    parts = [None, None]
    for c in range(n_chunks):
        sl = slice(c * 128, (c + 1) * 128)
        p = x_ref[:, :, sl] * ws[:, sl]
        if needs_mask:
            p = jnp.where(valid[:, :, sl], p, 0.0)      # NaN-safe ragged-tail mask
        i = c & 1
        parts[i] = p if parts[i] is None else parts[i] + p
    acc_ref[...] += parts[0] if parts[1] is None else parts[0] + parts[1]

    @pl.when(k == nk - 1)
    def _finalize():
        o_ref[...] = jnp.sum(acc_ref[...], axis=-1) * scale_ref[...]


def gaussian_sampler(X, wx, wy, sigmax, sigmay, xgrid, ygrid,
                     height_out, width_out, *, block_b=None, block_hw=None):
    """X: (B, C, H, W) f32; wx/wy/sigmax/sigmay: (C,) f32 (already masked);
    xgrid/ygrid: (H, W) f32.  Returns (B, C) f32."""
    B, C, H, W = X.shape
    assert H == W, "module assumes square spatial input (ny == nx)"
    assert H == height_out and W == width_out, \
        "normalization constant assumes X spatial dims == (height_out, width_out)"
    HW = H * W

    x = X.reshape(B, C, HW).astype(jnp.float32)
    xg = jnp.asarray(xgrid, jnp.float32).reshape(1, HW)
    yg = jnp.asarray(ygrid, jnp.float32).reshape(1, HW)

    # Per-channel precomputed columns: divides folded out of the (C, HW) path.
    sx = jnp.asarray(sigmax, jnp.float32)
    sy = jnp.asarray(sigmay, jnp.float32)
    wx_c = jnp.asarray(wx, jnp.float32).reshape(C, 1)
    wy_c = jnp.asarray(wy, jnp.float32).reshape(C, 1)
    isx = (0.5 / (sx * sx)).reshape(C, 1)
    isy = (0.5 / (sy * sy)).reshape(C, 1)
    norm_const = np.sqrt(2.0 * np.pi) * float(width_out) * float(height_out) / 4.0
    scale = (1.0 / (norm_const * sx * sy)).reshape(1, C)   # applied post-reduction

    # ---- HW tiling: full extent when it fits (fast path, no tail), otherwise
    #      the largest 128-multiple divisor of HW in [2048, 4096]; if none
    #      exists, a 4096 tile with an in-kernel masked ragged tail.
    if block_hw is None:
        if HW <= _MAX_BLOCK_HW:
            block_hw = HW
        else:
            block_hw = _MAX_BLOCK_HW
            for cand in range(_MAX_BLOCK_HW, 2048 - 1, -128):
                if HW % cand == 0:
                    block_hw = cand
                    break
    block_hw = min(block_hw, HW)
    nk = _cdiv(HW, block_hw)
    assert block_hw == HW or block_hw % 128 == 0, \
        "block_hw must be a multiple of 128 or the full spatial extent"
    needs_mask = (nk > 1) and (HW % block_hw != 0)

    # ---- batch tiling: biggest tile under the per-buffer VMEM budget; prefer a
    #      multiple of 8 dividing B; prefer >= 2 batch tiles on big problems so
    #      v7x megacore can shard the "parallel" axis across both TensorCores.
    per_row_bytes = C * block_hw * 4
    if block_b is None:
        budget_rows = max(8, _X_TILE_BUDGET // per_row_bytes)
        if B * C * HW * 4 >= (4 << 20) and B >= 16:
            budget_rows = min(budget_rows, max(8, (B // 2) // 8 * 8))
        if B <= budget_rows:
            block_b = B
        else:
            full = (budget_rows // 8) * 8
            block_b = full                      # ragged-tail fallback (masked writeback)
            floor = max(8, (full // 2 // 8) * 8)
            for cand in range(full, floor - 1, -8):
                if B % cand == 0:
                    block_b = cand
                    break
    block_b = min(block_b, B)
    nb = _cdiv(B, block_b)
    assert block_b == B or block_b % 8 == 0, \
        "block_b must be a multiple of 8 or the full batch"

    tiled = nk > 1
    if tiled:
        kernel = partial(_gs_kernel_tiled, hw_total=HW, block_hw=block_hw,
                         needs_mask=needs_mask)
        scratch_shapes = [pltpu.VMEM((block_b, C, 128), jnp.float32)]
    else:
        kernel = _gs_kernel_single
        scratch_shapes = []

    flops = 2 * B * C * HW + 8 * C * block_hw * nk * nb
    transcendentals = C * block_hw * nk * nb
    bytes_accessed = (B * C * HW + 2 * HW * nb + 6 * C + B * C) * 4

    out = pl.pallas_call(
        kernel,
        out_shape=jax.ShapeDtypeStruct((B, C), jnp.float32),
        grid_spec=pltpu.PrefetchScalarGridSpec(
            num_scalar_prefetch=0,
            grid=(nb, nk),
            in_specs=[
                pl.BlockSpec((block_b, C, block_hw), lambda b, k: (b, 0, k)),  # X
                pl.BlockSpec((1, block_hw), lambda b, k: (0, k)),              # xgrid
                pl.BlockSpec((1, block_hw), lambda b, k: (0, k)),              # ygrid
                pl.BlockSpec((C, 1), lambda b, k: (0, 0)),                     # wx
                pl.BlockSpec((C, 1), lambda b, k: (0, 0)),                     # wy
                pl.BlockSpec((C, 1), lambda b, k: (0, 0)),                     # 0.5/sx^2
                pl.BlockSpec((C, 1), lambda b, k: (0, 0)),                     # 0.5/sy^2
                pl.BlockSpec((1, C), lambda b, k: (0, 0)),                     # post-scale
            ],
            out_specs=pl.BlockSpec((block_b, C), lambda b, k: (b, 0)),
            scratch_shapes=scratch_shapes,
        ),
        compiler_params=pltpu.CompilerParams(
            dimension_semantics=("parallel", "arbitrary"),
            vmem_limit_bytes=48 * 1024 * 1024,   # double-buffered tiles well under; safe on v5e/v6e/v7x
        ),
        cost_estimate=pl.CostEstimate(
            flops=flops, transcendentals=transcendentals,
            bytes_accessed=bytes_accessed),
    )(x, xg, yg, wx_c, wy_c, isx, isy, scale)

    return out


def make_grids(height_out, width_out):
    """Replicates the PyTorch buffer construction (torch.meshgrid 'ij' indexing)."""
    offset_y = (height_out - 1) / height_out
    offset_x = (width_out - 1) / width_out
    ys = np.linspace(-offset_y, offset_y, height_out, dtype=np.float32)
    xs = np.linspace(-offset_x, offset_x, width_out, dtype=np.float32)
    ygrid, xgrid = np.meshgrid(ys, xs, indexing="ij")  # both (H, W)
    assert ygrid[1, 0] - ygrid[0, 0] > 0
    assert xgrid[1, 0] - xgrid[0, 0] == 0
    return xgrid.astype(np.float32), ygrid.astype(np.float32)


def ref_forward(X, wx, wy, sx, sy, xgrid, ygrid, height_out, width_out):
    """Pure-JAX reference mirroring the PyTorch sample=False forward."""
    B, C = X.shape[0], X.shape[1]
    sxv = sx[:, None]
    syv = sy[:, None]
    dx = (xgrid.reshape(1, -1) - wx[:, None]) ** 2 / 2.0 / sxv ** 2
    dy = (ygrid.reshape(1, -1) - wy[:, None]) ** 2 / 2.0 / syv ** 2
    ws = jnp.exp(-dx - dy) / (np.sqrt(2.0 * np.pi) * sxv * syv * width_out * height_out / 4.0)
    return jnp.einsum("ijk,jk->ij", X.reshape(B, C, -1), ws)


if __name__ == "__main__":
    # Module config (sample=False path).
    nchannels_total = 6

    # Static boolean mask selecting the channels present in X.
    mask = np.array([True, False, True, True, False, True])
    mask_idx = np.nonzero(mask)[0]
    nchannels = int(mask.sum())  # = 4

    # Deterministic parameter init (same distributions as the PyTorch __init__).
    key = jax.random.PRNGKey(0)
    k_x1, k_x2, k_x3, k_wx, k_wy, k_sx, k_sy = jax.random.split(key, 7)
    wx = -0.4 + 0.8 * jax.random.uniform(k_wx, (nchannels_total,), dtype=jnp.float32)
    wy = -0.4 + 0.8 * jax.random.uniform(k_wy, (nchannels_total,), dtype=jnp.float32)
    wsigmax = 0.5 + 0.1 * jax.random.uniform(k_sx, (nchannels_total,), dtype=jnp.float32)
    wsigmay = 0.5 + 0.1 * jax.random.uniform(k_sy, (nchannels_total,), dtype=jnp.float32)

    # Glue: apply the (static) boolean mask to the parameters.
    wx_m = wx[mask_idx]
    wy_m = wy[mask_idx]
    sx_m = wsigmax[mask_idx]
    sy_m = wsigmay[mask_idx]

    # --- Test 1: small batch, 16x16 grid -> single-step fast path (grid=(1,1),
    #     no accumulator scratch, no pl.when bookkeeping).
    h1 = w1 = 16
    xg1_np, yg1_np = make_grids(h1, w1)
    xg1, yg1 = jnp.asarray(xg1_np), jnp.asarray(yg1_np)
    X1 = jax.random.normal(k_x1, (2, nchannels, h1, w1), dtype=jnp.float32)
    R1 = jax.block_until_ready(
        gaussian_sampler(X1, wx_m, wy_m, sx_m, sy_m, xg1, yg1, h1, w1))
    R1_ref = jax.block_until_ready(
        ref_forward(X1, wx_m, wy_m, sx_m, sy_m, xg1, yg1, h1, w1))
    assert R1.shape == (2, nchannels)
    np.testing.assert_allclose(np.asarray(R1), np.asarray(R1_ref), rtol=1e-4, atol=1e-5)

    # --- Test 2: explicit tiling: grid = (2 batch tiles, 2 HW tiles) exercising
    #     the accumulator init/finalize across the HW reduction axis.
    X2 = jax.random.normal(k_x2, (16, nchannels, h1, w1), dtype=jnp.float32)
    R2 = jax.block_until_ready(
        gaussian_sampler(X2, wx_m, wy_m, sx_m, sy_m, xg1, yg1, h1, w1,
                         block_b=8, block_hw=128))
    R2_ref = jax.block_until_ready(
        ref_forward(X2, wx_m, wy_m, sx_m, sy_m, xg1, yg1, h1, w1))
    assert R2.shape == (16, nchannels)
    np.testing.assert_allclose(np.asarray(R2), np.asarray(R2_ref), rtol=1e-4, atol=1e-5)

    # --- Test 3: ragged tails without any wrapper-side padding: 20x20 spatial
    #     (HW=400, block_hw=128 -> masked HW tail) and B=20 with block_b=8
    #     (overhanging batch tile handled by masked output writeback).
    h3 = w3 = 20
    xg3_np, yg3_np = make_grids(h3, w3)
    xg3, yg3 = jnp.asarray(xg3_np), jnp.asarray(yg3_np)
    X3 = jax.random.normal(k_x3, (20, nchannels, h3, w3), dtype=jnp.float32)
    R3 = jax.block_until_ready(
        gaussian_sampler(X3, wx_m, wy_m, sx_m, sy_m, xg3, yg3, h3, w3,
                         block_b=8, block_hw=128))
    R3_ref = jax.block_until_ready(
        ref_forward(X3, wx_m, wy_m, sx_m, sy_m, xg3, yg3, h3, w3))
    assert R3.shape == (20, nchannels)
    np.testing.assert_allclose(np.asarray(R3), np.asarray(R3_ref), rtol=1e-4, atol=1e-5)

    print("KERNEL_OK")
</pallas_src>

<mosaic_0001>
module attributes {stable_mosaic.version = 11 : i64} {
  func.func @_gs_kernel_single(%arg0: i32, %arg1: i32, %arg2: memref<2x4x256xf32, #tpu.memory_space<vmem>>, %arg3: memref<1x256xf32, #tpu.memory_space<vmem>>, %arg4: memref<1x256xf32, #tpu.memory_space<vmem>>, %arg5: memref<4x1xf32, #tpu.memory_space<vmem>>, %arg6: memref<4x1xf32, #tpu.memory_space<vmem>>, %arg7: memref<4x1xf32, #tpu.memory_space<vmem>>, %arg8: memref<4x1xf32, #tpu.memory_space<vmem>>, %arg9: memref<1x4xf32, #tpu.memory_space<vmem>>, %arg10: memref<2x4xf32, #tpu.memory_space<vmem>>) attributes {dimension_semantics = [#tpu.dimension_semantics<parallel>, #tpu.dimension_semantics<arbitrary>], iteration_bounds = array<i64: 1, 1>, scalar_prefetch = 0 : i64, scratch_operands = 0 : i64, tpu.core_type = #tpu.core_type<tc>, window_params = [{transform_indices = @transform_0, window_bounds = array<i64: 2, 4, 256>}, {transform_indices = @transform_1, window_bounds = array<i64: 1, 256>}, {transform_indices = @transform_2, window_bounds = array<i64: 1, 256>}, {pipeline_mode = #tpu.pipeline_mode<synchronous>, transform_indices = @transform_3, window_bounds = array<i64: 4, 1>}, {pipeline_mode = #tpu.pipeline_mode<synchronous>, transform_indices = @transform_4, window_bounds = array<i64: 4, 1>}, {pipeline_mode = #tpu.pipeline_mode<synchronous>, transform_indices = @transform_5, window_bounds = array<i64: 4, 1>}, {pipeline_mode = #tpu.pipeline_mode<synchronous>, transform_indices = @transform_6, window_bounds = array<i64: 4, 1>}, {pipeline_mode = #tpu.pipeline_mode<synchronous>, transform_indices = @transform_7, window_bounds = array<i64: 1, 4>}, {transform_indices = @transform_8, window_bounds = array<i64: 2, 4>}]} {
    %c0 = arith.constant 0 : index
    %c0_0 = arith.constant 0 : index
    %0 = vector.load %arg3[%c0, %c0_0] : memref<1x256xf32, #tpu.memory_space<vmem>>, vector<1x256xf32>
    %c0_1 = arith.constant 0 : index
    %c0_2 = arith.constant 0 : index
    %1 = vector.load %arg5[%c0_1, %c0_2] : memref<4x1xf32, #tpu.memory_space<vmem>>, vector<4x1xf32>
    %2 = vector.broadcast %0 : vector<1x256xf32> to vector<4x256xf32>
    %3 = vector.broadcast %1 : vector<4x1xf32> to vector<4x256xf32>
    %4 = arith.subf %2, %3 : vector<4x256xf32>
    %c0_3 = arith.constant 0 : index
    %c0_4 = arith.constant 0 : index
    %5 = vector.load %arg4[%c0_3, %c0_4] : memref<1x256xf32, #tpu.memory_space<vmem>>, vector<1x256xf32>
    %c0_5 = arith.constant 0 : index
    %c0_6 = arith.constant 0 : index
    %6 = vector.load %arg6[%c0_5, %c0_6] : memref<4x1xf32, #tpu.memory_space<vmem>>, vector<4x1xf32>
    %7 = vector.broadcast %5 : vector<1x256xf32> to vector<4x256xf32>
    %8 = vector.broadcast %6 : vector<4x1xf32> to vector<4x256xf32>
    %9 = arith.subf %7, %8 : vector<4x256xf32>
    %10 = arith.mulf %4, %4 : vector<4x256xf32>
    %cst = arith.constant 0.000000e+00 : f32
    %11 = vector.broadcast %cst : f32 to vector<4x256xf32>
    %12 = arith.subf %11, %10 : vector<4x256xf32>
    %c0_7 = arith.constant 0 : index
    %c0_8 = arith.constant 0 : index
    %13 = vector.load %arg7[%c0_7, %c0_8] : memref<4x1xf32, #tpu.memory_space<vmem>>, vector<4x1xf32>
    %14 = vector.broadcast %13 : vector<4x1xf32> to vector<4x256xf32>
    %15 = arith.mulf %12, %14 : vector<4x256xf32>
    %16 = arith.mulf %9, %9 : vector<4x256xf32>
    %c0_9 = arith.constant 0 : index
    %c0_10 = arith.constant 0 : index
    %17 = vector.load %arg8[%c0_9, %c0_10] : memref<4x1xf32, #tpu.memory_space<vmem>>, vector<4x1xf32>
    %18 = vector.broadcast %17 : vector<4x1xf32> to vector<4x256xf32>
    %19 = arith.mulf %16, %18 : vector<4x256xf32>
    %20 = arith.subf %15, %19 : vector<4x256xf32>
    %21 = math.exp %20 : vector<4x256xf32>
    %c0_11 = arith.constant 0 : index
    %c0_12 = arith.constant 0 : index
    %c0_13 = arith.constant 0 : index
    %22 = vector.load %arg2[%c0_11, %c0_12, %c0_13] : memref<2x4x256xf32, #tpu.memory_space<vmem>>, vector<2x4x256xf32>
    %23 = vector.shape_cast %21 : vector<4x256xf32> to vector<1x4x256xf32>
    %24 = vector.broadcast %23 : vector<1x4x256xf32> to vector<2x4x256xf32>
    %25 = arith.mulf %22, %24 : vector<2x4x256xf32>
    %cst_14 = arith.constant dense<0.000000e+00> : vector<2x4xf32>
    %26 = vector.multi_reduction <add>, %25, %cst_14 [2] : vector<2x4x256xf32> to vector<2x4xf32>
    %c0_15 = arith.constant 0 : index
    %c0_16 = arith.constant 0 : index
    %27 = vector.load %arg9[%c0_15, %c0_16] : memref<1x4xf32, #tpu.memory_space<vmem>>, vector<1x4xf32>
    %28 = vector.broadcast %27 : vector<1x4xf32> to vector<2x4xf32>
    %29 = arith.mulf %26, %28 : vector<2x4xf32>
    %c0_17 = arith.constant 0 : index
    %c0_18 = arith.constant 0 : index
    %30 = vector.load %arg10[%c0_17, %c0_18] : memref<2x4xf32, #tpu.memory_space<vmem>>, vector<2x4xf32>
    tpu.vector_store %arg10[%c0_17, %c0_18], %29 {strides = array<i32>} : memref<2x4xf32, #tpu.memory_space<vmem>>, vector<2x4xf32>,
    return
  }
  func.func @transform_0(%arg0: i32, %arg1: i32) -> (i32, i32, i32) {
    %c0_i32 = arith.constant 0 : i32
    %c0_i32_0 = arith.constant 0 : i32
    return %arg0, %c0_i32, %arg1 : i32, i32, i32
  }
  func.func @transform_1(%arg0: i32, %arg1: i32) -> (i32, i32) {
    %c0_i32 = arith.constant 0 : i32
    %c0_i32_0 = arith.constant 0 : i32
    return %c0_i32, %arg1 : i32, i32
  }
  func.func @transform_2(%arg0: i32, %arg1: i32) -> (i32, i32) {
    %c0_i32 = arith.constant 0 : i32
    %c0_i32_0 = arith.constant 0 : i32
    return %c0_i32, %arg1 : i32, i32
  }
  func.func @transform_3(%arg0: i32, %arg1: i32) -> (i32, i32) {
    %c0_i32 = arith.constant 0 : i32
    %c0_i32_0 = arith.constant 0 : i32
    %c0_i32_1 = arith.constant 0 : i32
    return %c0_i32, %c0_i32_0 : i32, i32
  }
  func.func @transform_4(%arg0: i32, %arg1: i32) -> (i32, i32) {
    %c0_i32 = arith.constant 0 : i32
    %c0_i32_0 = arith.constant 0 : i32
    %c0_i32_1 = arith.constant 0 : i32
    return %c0_i32, %c0_i32_0 : i32, i32
  }
  func.func @transform_5(%arg0: i32, %arg1: i32) -> (i32, i32) {
    %c0_i32 = arith.constant 0 : i32
    %c0_i32_0 = arith.constant 0 : i32
    %c0_i32_1 = arith.constant 0 : i32
    return %c0_i32, %c0_i32_0 : i32, i32
  }
  func.func @transform_6(%arg0: i32, %arg1: i32) -> (i32, i32) {
    %c0_i32 = arith.constant 0 : i32
    %c0_i32_0 = arith.constant 0 : i32
    %c0_i32_1 = arith.constant 0 : i32
    return %c0_i32, %c0_i32_0 : i32, i32
  }
  func.func @transform_7(%arg0: i32, %arg1: i32) -> (i32, i32) {
    %c0_i32 = arith.constant 0 : i32
    %c0_i32_0 = arith.constant 0 : i32
    %c0_i32_1 = arith.constant 0 : i32
    return %c0_i32, %c0_i32_0 : i32, i32
  }
  func.func @transform_8(%arg0: i32, %arg1: i32) -> (i32, i32) {
    %c0_i32 = arith.constant 0 : i32
    %c0_i32_0 = arith.constant 0 : i32
    return %arg0, %c0_i32 : i32, i32
  }
}

</mosaic_0001>

<bundles_post_ra>
// kernel: tpu_custom_call.1
= control target key start
LH: loop header
LB: loop body
LE: loop exit
PB: predicated region body
PF: predicated region fallthrough
CT: control target
= control target key end

     0   :  { %v202_v2 = vmov 0   ;;  %s286_s0 = inlined_call_operand.vmem [shape: f32[2,4,256], index: 0, kind: input, shape index: {}]   ;;  %s287_s1 = inlined_call_operand.vmem [shape: f32[1,256], index: 1, kind: input, shape index: {}]   ;;  %s288_s2 = inlined_call_operand.vmem [shape: f32[1,256], index: 2, kind: input, shape index: {}]   ;;  %s289_s3 = inlined_call_operand.vmem [shape: f32[4,1], index: 3, kind: input, shape index: {}]   ;;  %s290_s4 = inlined_call_operand.vmem [shape: f32[4,1], index: 4, kind: input, shape index: {}]   ;;  %s291_s5 = inlined_call_operand.vmem [shape: f32[4,1], index: 5, kind: input, shape index: {}]   ;;  %s292_s6 = inlined_call_operand.vmem [shape: f32[4,1], index: 6, kind: input, shape index: {}]   ;;  %s293_s7 = inlined_call_operand.vmem [shape: f32[1,4], index: 7, kind: input, shape index: {}]   ;;  %s294_s8 = inlined_call_operand.hbm [shape: f32[2,4], index: 8, kind: output, shape index: {}]  }
   0x1   :  { %v62_v0 = vld [vmem:[%s291_s5] sm:$0xf]  ;;  %167 = vset.pattern.permute.xlu1 %v202_v2  ;;  %166 = vset.pattern.permute.xlu0 %v202_v2 }
   0x2   :  { %v31_v1 = vld [vmem:[%s289_s3] sm:$0xf]  ;;  %65 = vperm.xlu1 %167, %v62_v0  }
   0x3   :  { %39 = vperm.xlu0 %166, %v31_v1  }
   0x4   :  { %13 = vsyncpa [#allocation3], 0  ;;  %169 = vset.pattern.permute.xlu2 %v202_v2  ;;  %v72_v3 = vld [vmem:[%s292_s6] sm:$0xf]  ;;  %v122_v6 = vlaneseq  ;;  %vm91_vm0 = vcmask 1043456   ;;  %v87_v39 = vld [vmem:[%s286_s0 + $0x8] sm:$0xff] }
   0x5   :  { %v45_v4 = vld [vmem:[%s290_s4] sm:$0xf]  ;;  %s155_s19 = sshll.u32 %s294_s8, 4  ;;  %vm143_vm1 = vcmask 1041409   ;;  %vm146_vm2 = vcmask 25600   ;;  %s156_s19 = int_to_ptr.hbm [resolvable:$true] %s155_s19 }
   0x6   :  { %v30_v5 = vld [vmem:[%s287_s1] sm:$0x3]  ;;  %v123_v9 = vshrl.u32 %v122_v6, 7  ;;  %v140_v59 = vand.u32 127, %v122_v6 }
   0x7   :  { %v33_v7 = vperm.slane %v30_v5, 0  ;;  %v34_v8 = vperm.slane %v30_v5, 1  ;;  %v44_v14 = vld [vmem:[%s288_s2] sm:$0x3] }
   0x8   :  { %v47_v17 = vperm.slane %v44_v14, 0  ;;  %v48_v18 = vperm.slane %v44_v14, 1  ;;  %v171_v26 = vld [vmem:[%s293_s7] ss:$0 sm:$0xff] }
   0x9   :  { %v86_v38 = vld [vmem:[%s286_s0] sm:$0xff]  ;;  %s203_s0 = smov [#allocation2]  }
   0xa   :  { %75 = vperm.xlu1 %167, %v72_v3   ;;  %s153_s16 = sshll.u32 %s203_s0, 4  ;;  %s154_s16 = int_to_ptr.vmem [resolvable:$true] %s153_s16 }
   0xb   :  { %53 = vperm.xlu0 %166, %v45_v4  }
  0x13   :  { %168 = vset.pattern.permute.xlu0 %v123_v9 }
  0x1b   :  { %126 = vperm.xlu0 %168, %v171_v26  }
  0x23   :  { %170 = vset.pattern.permute.xlu0 %v202_v2 }
  0x74   :  { %v66_v13 = vpop.permute.xlu1 %65 }
  0x75   :  { %v40_v10 = vpop.permute.xlu0 %39 }
  0x76   :  { %v42_v11 = vsub.f32 %v33_v7, %v40_v10  ;;  %v43_v12 = vsub.f32 %v34_v8, %v40_v10 }
  0x78   :  { %v58_v15 = vmul.f32 %v42_v11, %v42_v11  ;;  %v59_v16 = vmul.f32 %v43_v12, %v43_v12 }
  0x7a   :  { %v60_v20 = vsub.f32 0.0, %v58_v15  ;;  %v61_v21 = vsub.f32 0.0, %v59_v16 }
  0x7c   :  { %v76_v27 = vpop.permute.xlu1 %75  ;;  %v68_v28 = vmul.f32 %v66_v13, %v60_v20  ;;  %v69_v29 = vmul.f32 %v66_v13, %v61_v21 }
  0x7d   :  { %v54_v19 = vpop.permute.xlu0 %53 }
  0x7e   :  { %v56_v22 = vsub.f32 %v47_v17, %v54_v19  ;;  %v57_v23 = vsub.f32 %v48_v18, %v54_v19 }
  0x80   :  { %v70_v24 = vmul.f32 %v56_v22, %v56_v22  ;;  %v71_v25 = vmul.f32 %v57_v23, %v57_v23 }
  0x82   :  { %v78_v30 = vmul.f32 %v76_v27, %v70_v24  ;;  %v79_v31 = vmul.f32 %v76_v27, %v71_v25 }
  0x84   :  { %v80_v32 = vsub.f32 %v68_v28, %v78_v30  ;;  %v81_v33 = vsub.f32 %v69_v29, %v79_v31 }
  0x86   :  { %v84_v34 = vmul.f32 1.442695, %v81_v33  ;;  %v82_v35 = vmul.f32 1.442695, %v80_v32 }
  0x88   :  { %172 = vpow2.f32 %v84_v34 }
  0x89   :  { %174 = vpow2.f32 %v82_v35 }
  0x8d   :  { %v127_v54 = vpop.permute.xlu0 %126 }
  0x8e   :  { %v173_v36 = vpop.eup %172 }
  0x8f   :  { %v90_v37 = vrot.slane %v173_v36, 4  ;;  %v175_v40 = vpop.eup %174 }
  0x91   :  { %v92_v41 = vsel %vm91_vm0, %v175_v40, %v90_v37 }
  0x92   :  { %v94_v42 = vmul.f32 %v92_v41, %v86_v38  ;;  %v95_v43 = vmul.f32 %v92_v41, %v87_v39 }
  0x94   :  { %98 = vst [vmem:[#allocation1] ss:$2 sm:$0xff] %v94_v42 }
  0x95   :  { %102 = vst [vmem:[#allocation1 + $0x10] ss:$2 sm:$0xff] %v95_v43 }
  0x9b   :  { %v99_v44 = vld.sshfl [vmem:[#allocation1] sm:$0xff pattern:$0x75316420]  ;;  %v100_v45 = vld.sshfl [vmem:[#allocation1 + $0x8] sm:$0xff pattern:$0x75316420] }
  0x9c   :  { %v109_v46 = vsel %vm91_vm0, %v99_v44, 0.0  ;;  %v110_v47 = vsel %vm91_vm0, %v100_v45, 0.0  ;;  %v103_v49 = vld.sshfl [vmem:[#allocation1 + $0x10] sm:$0xff pattern:$0x75316420] }
  0x9d   :  { %v111_v48 = vadd.f32 %v110_v47, %v109_v46  ;;  %v104_v50 = vld.sshfl [vmem:[#allocation1 + $0x18] sm:$0xff pattern:$0x75316420]  ;;  %v114_v51 = vsel %vm91_vm0, %v103_v49, 0.0 }
  0x9e   :  { %v115_v52 = vsel %vm91_vm0, %v104_v50, 0.0 }
  0x9f   :  { %112 = vadd.xlane.f32.xlu2 %v111_v48  ;;  %v116_v53 = vadd.f32 %v115_v52, %v114_v51 }
  0xa7   :  { %117 = vadd.xlane.f32.xlu2 %v116_v53 }
 0x112   :  { %v113_v55 = vpop.xlane.xlu2 %112 }
 0x113   :  { %v129_v56 = vmul.f32 %v127_v54, %v113_v55 }
 0x115   :  { %134 = vperm.xlu1 %167, %v129_v56  }
 0x11a   :  { %v118_v57 = vpop.xlane.xlu2 %117 }
 0x11b   :  { %v130_v58 = vmul.f32 %v127_v54, %v118_v57 }
 0x11d   :  { %137 = vperm.xlu2 %169, %v130_v58  }
 0x177   :  { %v138_v60 = vpop.permute.xlu2 %137 }
 0x178   :  { %v142_v62 = vperm.slane %v138_v60, %v140_v59 }
 0x187   :  { %v135_v61 = vpop.permute.xlu1 %134 }
 0x188   :  { %v141_v63 = vperm.slane %v135_v61, %v140_v59 }
 0x18a   :  { %v144_v0 = vsel %vm143_vm1, %v142_v62, %v141_v63 }
 0x18b   :  { %147 = vst.msk [vmem:[#allocation2] sm:$0x3] %vm146_vm2, %v144_v0 }
 0x18c   :  { %158 = dma.vmem_to_hbm [thread:$0]  %s154_s16, 32, %s156_s19, [#allocation3]  }
 0x18d   :  { %200 = dma.done.wait [#allocation3], 32  }
 0x18e   :  { %201 = vsyncadd [#allocation3], 4294967264 }
 0x18f   :  { %163 = vsyncpa [#allocation3], 1 }

</bundles_post_ra>
